<compile_context>
chip_gen: v5e
topology: v5e:2x2
jax: 0.10.0
libtpu: 0.0.40
codegen_flags: <defaults>
</compile_context>

<pallas_src>
import math

import jax
import jax.numpy as jnp
from jax.experimental import pallas as pl
from jax.experimental.pallas import tpu as pltpu


# ----------------------------- Config -------------------------------------
class Config:
    hidden_size = 32
    num_attention_heads = 4
    kv_channels = 8                 # head dim
    multi_query_attention = True
    multi_query_group_num = 2
    add_qkv_bias = True
    add_bias_linear = False
    attention_dropout = 0.0


# --------------------------- Fused Pallas kernel ----------------------------
def _make_fused_kernel(S, H, nh, ng, hd, scale):
    q_w = nh * hd          # query width in the mixed QKV layout
    kv_w = ng * hd          # key/value width (MQA groups)
    rep = nh // ng          # heads per KV group

    def kernel(x_ref, wqkv_ref, bqkv_ref, cos_ref, sin_ref, swap_ref,
               wdense_ref, o_ref, k_out_ref, v_out_ref):
        # ---- QKV projection: bf16 x bf16 -> f32 accumulate, + bias ---------
        x = x_ref[0]                                          # (S, H) bf16
        mixed = jnp.dot(x, wqkv_ref[...],
                        preferred_element_type=jnp.float32)
        mixed = mixed + bqkv_ref[...].astype(jnp.float32)
        mixed = mixed.astype(x.dtype)                         # bf16 (torch linear out)

        q = mixed[:, :q_w]                                    # (S, nh*hd)
        k = mixed[:, q_w:q_w + kv_w]                          # (S, ng*hd)
        v = mixed[:, q_w + kv_w:]                             # (S, ng*hd)

        # ---- partial interleaved rotary embedding ---------------------------
        # out = x*cos + swap(x)*sin_signed ; swap (even<->odd within rotated
        # pairs, identity on pass-through dims) is a constant permutation
        # matmul on the idle MXU (exact for bf16, no lane-rotate needed).
        cos = cos_ref[...]                                    # (S, nh*hd)
        sin = sin_ref[...]                                    # sign & zeros baked in

        def rope(t, w):
            sw = jnp.dot(t, swap_ref[:w, :w],
                         preferred_element_type=jnp.float32).astype(t.dtype)
            return t * cos[:, :w] + sw * sin[:, :w]

        q = rope(q, q_w)
        k = rope(k, kv_w)

        k_out_ref[0] = k                                      # post-rope K for kv_cache
        v_out_ref[0] = v

        # ---- causal attention per head + fused dense projection ------------
        # TODO(synk): causal mask assumes query_len == kv_len (prefill, no cache).
        rows = jax.lax.broadcasted_iota(jnp.int32, (S, S), 0)
        cols = jax.lax.broadcasted_iota(jnp.int32, (S, S), 1)
        causal = cols <= rows

        acc = jnp.zeros((S, H), jnp.float32)
        for h in range(nh):                                   # static unroll (nh=4)
            g = h // rep                                      # shared MQA group
            q_h = q[:, h * hd:(h + 1) * hd]                   # (S, hd) bf16
            k_g = k[:, g * hd:(g + 1) * hd]
            v_g = v[:, g * hd:(g + 1) * hd]
            # scores: bf16 straight to the MXU, contract last dims (no k.T copy)
            s = jax.lax.dot_general(
                q_h, k_g, (((1,), (1,)), ((), ())),
                preferred_element_type=jnp.float32) * scale
            s = jnp.where(causal, s, -jnp.inf)
            m = jnp.max(s, axis=-1, keepdims=True)
            p = jnp.exp(s - m)                                # EUP
            p = p * pl.reciprocal(jnp.sum(p, axis=-1, keepdims=True),
                                  approx=True)                # EUP, no VALU divide
            ctx = jnp.dot(p, v_g.astype(jnp.float32),         # probs stay f32
                          preferred_element_type=jnp.float32)
            ctx = ctx.astype(x.dtype)                         # flash_attn out dtype
            # dense projection fused per head: out += ctx_h @ W[h*hd:(h+1)*hd, :]
            acc = acc + jnp.dot(ctx, wdense_ref[h * hd:(h + 1) * hd, :],
                                preferred_element_type=jnp.float32)
        o_ref[0] = acc.astype(o_ref.dtype)                    # lane-dense (S, H)

    return kernel


def fused_attention_block(hidden_states, wqkv, bqkv, wdense, cos_q, sin_q,
                          swap_p, cfg):
    B, S, H = hidden_states.shape
    nh = cfg.num_attention_heads
    hd = cfg.kv_channels
    ng = cfg.multi_query_group_num
    q_w, kv_w = nh * hd, ng * hd
    qkv_w = q_w + 2 * kv_w
    kernel = _make_fused_kernel(S, H, nh, ng, hd, 1.0 / math.sqrt(hd))
    return pl.pallas_call(
        kernel,
        out_shape=(
            jax.ShapeDtypeStruct((B, S, H), hidden_states.dtype),
            jax.ShapeDtypeStruct((B, S, kv_w), hidden_states.dtype),
            jax.ShapeDtypeStruct((B, S, kv_w), hidden_states.dtype),
        ),
        grid=(B,),
        in_specs=[
            pl.BlockSpec((1, S, H), lambda b: (b, 0, 0)),     # hidden states
            pl.BlockSpec((H, qkv_w), lambda b: (0, 0)),       # Wqkv
            pl.BlockSpec((1, qkv_w), lambda b: (0, 0)),       # bqkv
            pl.BlockSpec((S, q_w), lambda b: (0, 0)),         # rope cos table
            pl.BlockSpec((S, q_w), lambda b: (0, 0)),         # rope signed-sin table
            pl.BlockSpec((q_w, q_w), lambda b: (0, 0)),       # pair-swap permutation
            pl.BlockSpec((q_w, H), lambda b: (0, 0)),         # Wdense
        ],
        out_specs=(
            pl.BlockSpec((1, S, H), lambda b: (b, 0, 0)),
            pl.BlockSpec((1, S, kv_w), lambda b: (b, 0, 0)),
            pl.BlockSpec((1, S, kv_w), lambda b: (b, 0, 0)),
        ),
        compiler_params=pltpu.CompilerParams(
            dimension_semantics=("parallel",)),
    )(hidden_states, wqkv, bqkv, cos_q, sin_q, swap_p, wdense)


# ----------------------------- JAX glue ------------------------------------
def _rope_coeffs(rope_cache, S, nh, hd, dtype):
    """rope_cache [1, >=S, rot_dim//2, 2] -> (cos, signed_sin) tables of shape
    (S, nh*hd) laid out for the flat per-head interleaved-pair layout."""
    half = rope_cache.shape[-2]
    rot_dim = 2 * half
    rc = rope_cache[0, :S].astype(jnp.float32)                 # (S, half, 2)
    cos = jnp.repeat(rc[..., 0], 2, axis=-1)                   # c0 c0 c1 c1 ...
    sin = jnp.repeat(rc[..., 1], 2, axis=-1)
    sign = jnp.tile(jnp.array([-1.0, 1.0], jnp.float32), (half,))
    sin = sin * sign[None, :]                                  # even:-sin odd:+sin
    cos = jnp.concatenate([cos, jnp.ones((S, hd - rot_dim), jnp.float32)], -1)
    sin = jnp.concatenate([sin, jnp.zeros((S, hd - rot_dim), jnp.float32)], -1)
    cos = jnp.tile(cos, (1, nh)).astype(dtype)                 # (S, nh*hd)
    sin = jnp.tile(sin, (1, nh)).astype(dtype)
    return cos, sin


def _pair_swap_matrix(width, hd, rot_dim, dtype):
    """Permutation matrix: swaps each interleaved pair inside the rotated part
    of every head, identity on the pass-through part. (x @ P)[d] = x[partner(d)]."""
    idx = jnp.arange(width)
    partner = jnp.where((idx % hd) < rot_dim, idx ^ 1, idx)
    return (partner[:, None] == idx[None, :]).astype(dtype)


def attention_block_forward(params, hidden_states, rotary_pos_emb, cfg,
                            kv_cache=None, use_cache=True):
    if kv_cache is not None:
        # TODO(synk): decode path (kv_cache given, query_len != kv_len) not implemented.
        raise NotImplementedError("kv_cache input path not implemented")
    B, S, H = hidden_states.shape
    nh = cfg.num_attention_heads
    hd = cfg.kv_channels
    ng = cfg.multi_query_group_num
    dt = hidden_states.dtype

    if rotary_pos_emb is not None:
        rot_dim = rotary_pos_emb.shape[-2] * 2
        cos_q, sin_q = _rope_coeffs(rotary_pos_emb, S, nh, hd, dt)
    else:
        rot_dim = 0
        cos_q = jnp.ones((S, nh * hd), dt)
        sin_q = jnp.zeros((S, nh * hd), dt)
    swap_p = _pair_swap_matrix(nh * hd, hd, rot_dim, dt)

    out, k_new, v_new = fused_attention_block(
        hidden_states, params["wqkv"], params["bqkv"], params["wdense"],
        cos_q, sin_q, swap_p, cfg)

    new_kv_cache = None
    if use_cache:
        # torch semantics for kv_cache=None: stacked [1, 2, B, ng, S, hd]
        k = k_new.reshape(B, S, ng, hd).transpose(0, 2, 1, 3)
        v = v_new.reshape(B, S, ng, hd).transpose(0, 2, 1, 3)
        new_kv_cache = jnp.concatenate([k[None, None], v[None, None]], axis=1)
    return out, new_kv_cache


# ------------------------------- Main ---------------------------------------
if __name__ == "__main__":
    cfg = Config()
    B, S = 2, 8
    H = cfg.hidden_size
    nh = cfg.num_attention_heads
    hd = cfg.kv_channels
    ng = cfg.multi_query_group_num
    proj = nh * hd
    qkv_hidden = proj + 2 * hd * ng

    key = jax.random.PRNGKey(0)
    k1, k2, k3, k4 = jax.random.split(key, 4)

    params = {
        # nn.Linear stores weight as [out, in]; kept pre-transposed to
        # [in, out] for the kernel's x @ w convention.
        "wqkv": (0.05 * jax.random.normal(k1, (H, qkv_hidden))).astype(
            jnp.bfloat16),
        "bqkv": (0.05 * jax.random.normal(k2, (1, qkv_hidden))).astype(
            jnp.bfloat16),
        "wdense": (0.05 * jax.random.normal(k3, (proj, H))).astype(
            jnp.bfloat16),
        # add_bias_linear=False -> no dense bias at all (not even zeros).
    }

    hidden_states = jax.random.normal(k4, (B, S, H)).astype(jnp.bfloat16)

    # rope_cache: [1, S, rot_dim//2, 2]; GLM uses partial rotary over hd//2.
    rot_dim = hd // 2
    inv_freq = 1.0 / (10000.0 ** (jnp.arange(0, rot_dim // 2) * 2.0 / rot_dim))
    pos = jnp.arange(S, dtype=jnp.float32)
    freqs = pos[:, None] * inv_freq[None, :]
    rope_cache = jnp.stack([jnp.cos(freqs), jnp.sin(freqs)], axis=-1)
    rope_cache = rope_cache[None].astype(jnp.bfloat16)   # [1, S, rot//2, 2]

    fwd = jax.jit(lambda p, x, r: attention_block_forward(p, x, r, cfg))
    out, kv_cache = fwd(params, hidden_states, rope_cache)
    jax.block_until_ready(out)
    jax.block_until_ready(kv_cache)

    assert out.shape == (B, S, H) and out.dtype == jnp.bfloat16
    assert kv_cache.shape == (1, 2, B, ng, S, hd)
    print("KERNEL_OK")
</pallas_src>

<mosaic_0001>
module attributes {stable_mosaic.version = 11 : i64} {
  func.func @kernel(%arg0: i32, %arg1: memref<1x8x32xbf16, #tpu.memory_space<vmem>>, %arg2: memref<32x64xbf16, #tpu.memory_space<vmem>>, %arg3: memref<1x64xbf16, #tpu.memory_space<vmem>>, %arg4: memref<8x32xbf16, #tpu.memory_space<vmem>>, %arg5: memref<8x32xbf16, #tpu.memory_space<vmem>>, %arg6: memref<32x32xbf16, #tpu.memory_space<vmem>>, %arg7: memref<32x32xbf16, #tpu.memory_space<vmem>>, %arg8: memref<1x8x32xbf16, #tpu.memory_space<vmem>>, %arg9: memref<1x8x16xbf16, #tpu.memory_space<vmem>>, %arg10: memref<1x8x16xbf16, #tpu.memory_space<vmem>>) attributes {dimension_semantics = [#tpu.dimension_semantics<parallel>], iteration_bounds = array<i64: 2>, scalar_prefetch = 0 : i64, scratch_operands = 0 : i64, tpu.core_type = #tpu.core_type<tc>, window_params = [{transform_indices = @transform_0, window_bounds = array<i64: 1, 8, 32>}, {pipeline_mode = #tpu.pipeline_mode<synchronous>, transform_indices = @transform_1, window_bounds = array<i64: 32, 64>}, {pipeline_mode = #tpu.pipeline_mode<synchronous>, transform_indices = @transform_2, window_bounds = array<i64: 1, 64>}, {pipeline_mode = #tpu.pipeline_mode<synchronous>, transform_indices = @transform_3, window_bounds = array<i64: 8, 32>}, {pipeline_mode = #tpu.pipeline_mode<synchronous>, transform_indices = @transform_4, window_bounds = array<i64: 8, 32>}, {pipeline_mode = #tpu.pipeline_mode<synchronous>, transform_indices = @transform_5, window_bounds = array<i64: 32, 32>}, {pipeline_mode = #tpu.pipeline_mode<synchronous>, transform_indices = @transform_6, window_bounds = array<i64: 32, 32>}, {transform_indices = @transform_7, window_bounds = array<i64: 1, 8, 32>}, {transform_indices = @transform_8, window_bounds = array<i64: 1, 8, 16>}, {transform_indices = @transform_9, window_bounds = array<i64: 1, 8, 16>}]} {
    %c0 = arith.constant 0 : index
    %c0_0 = arith.constant 0 : index
    %c0_1 = arith.constant 0 : index
    %0 = vector.load %arg1[%c0, %c0_0, %c0_1] : memref<1x8x32xbf16, #tpu.memory_space<vmem>>, vector<1x8x32xbf16>
    %1 = vector.shape_cast %0 : vector<1x8x32xbf16> to vector<8x32xbf16>
    %c0_2 = arith.constant 0 : index
    %c0_3 = arith.constant 0 : index
    %2 = vector.load %arg2[%c0_2, %c0_3] : memref<32x64xbf16, #tpu.memory_space<vmem>>, vector<32x64xbf16>
    %cst = arith.constant dense<0.000000e+00> : vector<8x64xf32>
    %3 = tpu.matmul %1, %2, %cst {dimension_numbers = #tpu.dot_dimension_numbers<[1], [0], [0], [1], [0, 0, 1, 1], [], []>} : vector<8x32xbf16>, vector<32x64xbf16>, vector<8x64xf32> -> vector<8x64xf32>
    %c0_4 = arith.constant 0 : index
    %c0_5 = arith.constant 0 : index
    %4 = vector.load %arg3[%c0_4, %c0_5] : memref<1x64xbf16, #tpu.memory_space<vmem>>, vector<1x64xbf16>
    %5 = arith.extf %4 : vector<1x64xbf16> to vector<1x64xf32>
    %6 = vector.broadcast %5 : vector<1x64xf32> to vector<8x64xf32>
    %7 = arith.addf %3, %6 : vector<8x64xf32>
    %8 = arith.truncf %7 : vector<8x64xf32> to vector<8x64xbf16>
    %9 = vector.extract_strided_slice %8 {offsets = [0, 0], sizes = [8, 32], strides = [1, 1]} : vector<8x64xbf16> to vector<8x32xbf16>
    %10 = vector.extract_strided_slice %8 {offsets = [0, 32], sizes = [8, 16], strides = [1, 1]} : vector<8x64xbf16> to vector<8x16xbf16>
    %11 = vector.extract_strided_slice %8 {offsets = [0, 48], sizes = [8, 16], strides = [1, 1]} : vector<8x64xbf16> to vector<8x16xbf16>
    %c0_6 = arith.constant 0 : index
    %c0_7 = arith.constant 0 : index
    %12 = vector.load %arg4[%c0_6, %c0_7] : memref<8x32xbf16, #tpu.memory_space<vmem>>, vector<8x32xbf16>
    %c0_8 = arith.constant 0 : index
    %c0_9 = arith.constant 0 : index
    %13 = vector.load %arg5[%c0_8, %c0_9] : memref<8x32xbf16, #tpu.memory_space<vmem>>, vector<8x32xbf16>
    %c0_10 = arith.constant 0 : index
    %c0_11 = arith.constant 0 : index
    %14 = vector.load %arg6[%c0_10, %c0_11] : memref<32x32xbf16, #tpu.memory_space<vmem>>, vector<32x32xbf16>
    %cst_12 = arith.constant dense<0.000000e+00> : vector<8x32xf32>
    %15 = tpu.matmul %9, %14, %cst_12 {dimension_numbers = #tpu.dot_dimension_numbers<[1], [0], [0], [1], [0, 0, 1, 1], [], []>} : vector<8x32xbf16>, vector<32x32xbf16>, vector<8x32xf32> -> vector<8x32xf32>
    %16 = arith.truncf %15 : vector<8x32xf32> to vector<8x32xbf16>
    %17 = arith.mulf %9, %12 : vector<8x32xbf16>
    %18 = arith.mulf %16, %13 : vector<8x32xbf16>
    %19 = arith.addf %17, %18 : vector<8x32xbf16>
    %c0_13 = arith.constant 0 : index
    %c0_14 = arith.constant 0 : index
    %20 = vector.load %arg6[%c0_13, %c0_14] : memref<32x32xbf16, #tpu.memory_space<vmem>>, vector<16x16xbf16>
    %cst_15 = arith.constant dense<0.000000e+00> : vector<8x16xf32>
    %21 = tpu.matmul %10, %20, %cst_15 {dimension_numbers = #tpu.dot_dimension_numbers<[1], [0], [0], [1], [0, 0, 1, 1], [], []>} : vector<8x16xbf16>, vector<16x16xbf16>, vector<8x16xf32> -> vector<8x16xf32>
    %22 = arith.truncf %21 : vector<8x16xf32> to vector<8x16xbf16>
    %23 = vector.extract_strided_slice %12 {offsets = [0, 0], sizes = [8, 16], strides = [1, 1]} : vector<8x32xbf16> to vector<8x16xbf16>
    %24 = arith.mulf %10, %23 : vector<8x16xbf16>
    %25 = vector.extract_strided_slice %13 {offsets = [0, 0], sizes = [8, 16], strides = [1, 1]} : vector<8x32xbf16> to vector<8x16xbf16>
    %26 = arith.mulf %22, %25 : vector<8x16xbf16>
    %27 = arith.addf %24, %26 : vector<8x16xbf16>
    %c0_16 = arith.constant 0 : index
    %c0_17 = arith.constant 0 : index
    %c0_18 = arith.constant 0 : index
    %28 = vector.load %arg9[%c0_16, %c0_17, %c0_18] : memref<1x8x16xbf16, #tpu.memory_space<vmem>>, vector<1x8x16xbf16>
    %29 = vector.shape_cast %28 : vector<1x8x16xbf16> to vector<8x16xbf16>
    %30 = vector.shape_cast %27 : vector<8x16xbf16> to vector<1x8x16xbf16>
    tpu.vector_store %arg9[%c0_16, %c0_17, %c0_18], %30 {strides = array<i32>} : memref<1x8x16xbf16, #tpu.memory_space<vmem>>, vector<1x8x16xbf16>,
    %c0_19 = arith.constant 0 : index
    %c0_20 = arith.constant 0 : index
    %c0_21 = arith.constant 0 : index
    %31 = vector.load %arg10[%c0_19, %c0_20, %c0_21] : memref<1x8x16xbf16, #tpu.memory_space<vmem>>, vector<1x8x16xbf16>
    %32 = vector.shape_cast %31 : vector<1x8x16xbf16> to vector<8x16xbf16>
    %33 = vector.shape_cast %11 : vector<8x16xbf16> to vector<1x8x16xbf16>
    tpu.vector_store %arg10[%c0_19, %c0_20, %c0_21], %33 {strides = array<i32>} : memref<1x8x16xbf16, #tpu.memory_space<vmem>>, vector<1x8x16xbf16>,
    %34 = tpu.iota {dimensions = array<i32: 0>} : vector<8x8xi32>
    %35 = tpu.iota {dimensions = array<i32: 1>} : vector<8x8xi32>
    %36 = arith.cmpi sle, %35, %34 : vector<8x8xi32>
    %cst_22 = arith.constant 0.000000e+00 : f32
    %37 = vector.broadcast %cst_22 : f32 to vector<8x32xf32>
    %38 = vector.extract_strided_slice %19 {offsets = [0, 0], sizes = [8, 8], strides = [1, 1]} : vector<8x32xbf16> to vector<8x8xbf16>
    %39 = vector.extract_strided_slice %27 {offsets = [0, 0], sizes = [8, 8], strides = [1, 1]} : vector<8x16xbf16> to vector<8x8xbf16>
    %40 = vector.extract_strided_slice %11 {offsets = [0, 0], sizes = [8, 8], strides = [1, 1]} : vector<8x16xbf16> to vector<8x8xbf16>
    %cst_23 = arith.constant dense<0.000000e+00> : vector<8x8xf32>
    %41 = tpu.matmul %38, %39, %cst_23 {dimension_numbers = #tpu.dot_dimension_numbers<[1], [1], [0], [0], [0, 0, 1, 0], [], []>} : vector<8x8xbf16>, vector<8x8xbf16>, vector<8x8xf32> -> vector<8x8xf32>
    %cst_24 = arith.constant 0.353553385 : f32
    %42 = vector.broadcast %cst_24 : f32 to vector<8x8xf32>
    %43 = arith.mulf %41, %42 : vector<8x8xf32>
    %cst_25 = arith.constant 0xFF800000 : f32
    %44 = vector.broadcast %cst_25 : f32 to vector<8x8xf32>
    %45 = arith.select %36, %43, %44 : vector<8x8xi1>, vector<8x8xf32>
    %cst_26 = arith.constant dense<0xFF800000> : vector<8xf32>
    %46 = vector.multi_reduction <maximumf>, %45, %cst_26 [1] : vector<8x8xf32> to vector<8xf32>
    %47 = vector.shape_cast %46 : vector<8xf32> to vector<8x1xf32>
    %48 = vector.broadcast %47 : vector<8x1xf32> to vector<8x8xf32>
    %49 = arith.subf %45, %48 : vector<8x8xf32>
    %50 = math.exp %49 : vector<8x8xf32>
    %cst_27 = arith.constant dense<0.000000e+00> : vector<8xf32>
    %51 = vector.multi_reduction <add>, %50, %cst_27 [1] : vector<8x8xf32> to vector<8xf32>
    %52 = vector.shape_cast %51 : vector<8xf32> to vector<8x1xf32>
    %53 = tpu.reciprocal %52 {approx = true} : vector<8x1xf32> -> vector<8x1xf32>
    %54 = vector.broadcast %53 : vector<8x1xf32> to vector<8x8xf32>
    %55 = arith.mulf %50, %54 : vector<8x8xf32>
    %56 = arith.extf %40 : vector<8x8xbf16> to vector<8x8xf32>
    %cst_28 = arith.constant dense<0.000000e+00> : vector<8x8xf32>
    %57 = tpu.matmul %55, %56, %cst_28 {dimension_numbers = #tpu.dot_dimension_numbers<[1], [0], [0], [1], [0, 0, 1, 1], [], []>} : vector<8x8xf32>, vector<8x8xf32>, vector<8x8xf32> -> vector<8x8xf32>
    %58 = arith.truncf %57 : vector<8x8xf32> to vector<8x8xbf16>
    %c0_29 = arith.constant 0 : index
    %c0_30 = arith.constant 0 : index
    %59 = vector.load %arg7[%c0_29, %c0_30] : memref<32x32xbf16, #tpu.memory_space<vmem>>, vector<8x32xbf16>
    %cst_31 = arith.constant dense<0.000000e+00> : vector<8x32xf32>
    %60 = tpu.matmul %58, %59, %cst_31 {dimension_numbers = #tpu.dot_dimension_numbers<[1], [0], [0], [1], [0, 0, 1, 1], [], []>} : vector<8x8xbf16>, vector<8x32xbf16>, vector<8x32xf32> -> vector<8x32xf32>
    %61 = arith.addf %37, %60 : vector<8x32xf32>
    %62 = vector.extract_strided_slice %19 {offsets = [0, 8], sizes = [8, 8], strides = [1, 1]} : vector<8x32xbf16> to vector<8x8xbf16>
    %63 = vector.extract_strided_slice %27 {offsets = [0, 0], sizes = [8, 8], strides = [1, 1]} : vector<8x16xbf16> to vector<8x8xbf16>
    %64 = vector.extract_strided_slice %11 {offsets = [0, 0], sizes = [8, 8], strides = [1, 1]} : vector<8x16xbf16> to vector<8x8xbf16>
    %cst_32 = arith.constant dense<0.000000e+00> : vector<8x8xf32>
    %65 = tpu.matmul %62, %63, %cst_32 {dimension_numbers = #tpu.dot_dimension_numbers<[1], [1], [0], [0], [0, 0, 1, 0], [], []>} : vector<8x8xbf16>, vector<8x8xbf16>, vector<8x8xf32> -> vector<8x8xf32>
    %cst_33 = arith.constant 0.353553385 : f32
    %66 = vector.broadcast %cst_33 : f32 to vector<8x8xf32>
    %67 = arith.mulf %65, %66 : vector<8x8xf32>
    %cst_34 = arith.constant 0xFF800000 : f32
    %68 = vector.broadcast %cst_34 : f32 to vector<8x8xf32>
    %69 = arith.select %36, %67, %68 : vector<8x8xi1>, vector<8x8xf32>
    %cst_35 = arith.constant dense<0xFF800000> : vector<8xf32>
    %70 = vector.multi_reduction <maximumf>, %69, %cst_35 [1] : vector<8x8xf32> to vector<8xf32>
    %71 = vector.shape_cast %70 : vector<8xf32> to vector<8x1xf32>
    %72 = vector.broadcast %71 : vector<8x1xf32> to vector<8x8xf32>
    %73 = arith.subf %69, %72 : vector<8x8xf32>
    %74 = math.exp %73 : vector<8x8xf32>
    %cst_36 = arith.constant dense<0.000000e+00> : vector<8xf32>
    %75 = vector.multi_reduction <add>, %74, %cst_36 [1] : vector<8x8xf32> to vector<8xf32>
    %76 = vector.shape_cast %75 : vector<8xf32> to vector<8x1xf32>
    %77 = tpu.reciprocal %76 {approx = true} : vector<8x1xf32> -> vector<8x1xf32>
    %78 = vector.broadcast %77 : vector<8x1xf32> to vector<8x8xf32>
    %79 = arith.mulf %74, %78 : vector<8x8xf32>
    %80 = arith.extf %64 : vector<8x8xbf16> to vector<8x8xf32>
    %cst_37 = arith.constant dense<0.000000e+00> : vector<8x8xf32>
    %81 = tpu.matmul %79, %80, %cst_37 {dimension_numbers = #tpu.dot_dimension_numbers<[1], [0], [0], [1], [0, 0, 1, 1], [], []>} : vector<8x8xf32>, vector<8x8xf32>, vector<8x8xf32> -> vector<8x8xf32>
    %82 = arith.truncf %81 : vector<8x8xf32> to vector<8x8xbf16>
    %c8 = arith.constant 8 : index
    %c0_38 = arith.constant 0 : index
    %83 = vector.load %arg7[%c8, %c0_38] : memref<32x32xbf16, #tpu.memory_space<vmem>>, vector<8x32xbf16>
    %cst_39 = arith.constant dense<0.000000e+00> : vector<8x32xf32>
    %84 = tpu.matmul %82, %83, %cst_39 {dimension_numbers = #tpu.dot_dimension_numbers<[1], [0], [0], [1], [0, 0, 1, 1], [], []>} : vector<8x8xbf16>, vector<8x32xbf16>, vector<8x32xf32> -> vector<8x32xf32>
    %85 = arith.addf %61, %84 : vector<8x32xf32>
    %86 = vector.extract_strided_slice %19 {offsets = [0, 16], sizes = [8, 8], strides = [1, 1]} : vector<8x32xbf16> to vector<8x8xbf16>
    %87 = vector.extract_strided_slice %27 {offsets = [0, 8], sizes = [8, 8], strides = [1, 1]} : vector<8x16xbf16> to vector<8x8xbf16>
    %88 = vector.extract_strided_slice %11 {offsets = [0, 8], sizes = [8, 8], strides = [1, 1]} : vector<8x16xbf16> to vector<8x8xbf16>
    %cst_40 = arith.constant dense<0.000000e+00> : vector<8x8xf32>
    %89 = tpu.matmul %86, %87, %cst_40 {dimension_numbers = #tpu.dot_dimension_numbers<[1], [1], [0], [0], [0, 0, 1, 0], [], []>} : vector<8x8xbf16>, vector<8x8xbf16>, vector<8x8xf32> -> vector<8x8xf32>
    %cst_41 = arith.constant 0.353553385 : f32
    %90 = vector.broadcast %cst_41 : f32 to vector<8x8xf32>
    %91 = arith.mulf %89, %90 : vector<8x8xf32>
    %cst_42 = arith.constant 0xFF800000 : f32
    %92 = vector.broadcast %cst_42 : f32 to vector<8x8xf32>
    %93 = arith.select %36, %91, %92 : vector<8x8xi1>, vector<8x8xf32>
    %cst_43 = arith.constant dense<0xFF800000> : vector<8xf32>
    %94 = vector.multi_reduction <maximumf>, %93, %cst_43 [1] : vector<8x8xf32> to vector<8xf32>
    %95 = vector.shape_cast %94 : vector<8xf32> to vector<8x1xf32>
    %96 = vector.broadcast %95 : vector<8x1xf32> to vector<8x8xf32>
    %97 = arith.subf %93, %96 : vector<8x8xf32>
    %98 = math.exp %97 : vector<8x8xf32>
    %cst_44 = arith.constant dense<0.000000e+00> : vector<8xf32>
    %99 = vector.multi_reduction <add>, %98, %cst_44 [1] : vector<8x8xf32> to vector<8xf32>
    %100 = vector.shape_cast %99 : vector<8xf32> to vector<8x1xf32>
    %101 = tpu.reciprocal %100 {approx = true} : vector<8x1xf32> -> vector<8x1xf32>
    %102 = vector.broadcast %101 : vector<8x1xf32> to vector<8x8xf32>
    %103 = arith.mulf %98, %102 : vector<8x8xf32>
    %104 = arith.extf %88 : vector<8x8xbf16> to vector<8x8xf32>
    %cst_45 = arith.constant dense<0.000000e+00> : vector<8x8xf32>
    %105 = tpu.matmul %103, %104, %cst_45 {dimension_numbers = #tpu.dot_dimension_numbers<[1], [0], [0], [1], [0, 0, 1, 1], [], []>} : vector<8x8xf32>, vector<8x8xf32>, vector<8x8xf32> -> vector<8x8xf32>
    %106 = arith.truncf %105 : vector<8x8xf32> to vector<8x8xbf16>
    %c16 = arith.constant 16 : index
    %c0_46 = arith.constant 0 : index
    %107 = vector.load %arg7[%c16, %c0_46] : memref<32x32xbf16, #tpu.memory_space<vmem>>, vector<8x32xbf16>
    %cst_47 = arith.constant dense<0.000000e+00> : vector<8x32xf32>
    %108 = tpu.matmul %106, %107, %cst_47 {dimension_numbers = #tpu.dot_dimension_numbers<[1], [0], [0], [1], [0, 0, 1, 1], [], []>} : vector<8x8xbf16>, vector<8x32xbf16>, vector<8x32xf32> -> vector<8x32xf32>
    %109 = arith.addf %85, %108 : vector<8x32xf32>
    %110 = vector.extract_strided_slice %19 {offsets = [0, 24], sizes = [8, 8], strides = [1, 1]} : vector<8x32xbf16> to vector<8x8xbf16>
    %111 = vector.extract_strided_slice %27 {offsets = [0, 8], sizes = [8, 8], strides = [1, 1]} : vector<8x16xbf16> to vector<8x8xbf16>
    %112 = vector.extract_strided_slice %11 {offsets = [0, 8], sizes = [8, 8], strides = [1, 1]} : vector<8x16xbf16> to vector<8x8xbf16>
    %cst_48 = arith.constant dense<0.000000e+00> : vector<8x8xf32>
    %113 = tpu.matmul %110, %111, %cst_48 {dimension_numbers = #tpu.dot_dimension_numbers<[1], [1], [0], [0], [0, 0, 1, 0], [], []>} : vector<8x8xbf16>, vector<8x8xbf16>, vector<8x8xf32> -> vector<8x8xf32>
    %cst_49 = arith.constant 0.353553385 : f32
    %114 = vector.broadcast %cst_49 : f32 to vector<8x8xf32>
    %115 = arith.mulf %113, %114 : vector<8x8xf32>
    %cst_50 = arith.constant 0xFF800000 : f32
    %116 = vector.broadcast %cst_50 : f32 to vector<8x8xf32>
    %117 = arith.select %36, %115, %116 : vector<8x8xi1>, vector<8x8xf32>
    %cst_51 = arith.constant dense<0xFF800000> : vector<8xf32>
    %118 = vector.multi_reduction <maximumf>, %117, %cst_51 [1] : vector<8x8xf32> to vector<8xf32>
    %119 = vector.shape_cast %118 : vector<8xf32> to vector<8x1xf32>
    %120 = vector.broadcast %119 : vector<8x1xf32> to vector<8x8xf32>
    %121 = arith.subf %117, %120 : vector<8x8xf32>
    %122 = math.exp %121 : vector<8x8xf32>
    %cst_52 = arith.constant dense<0.000000e+00> : vector<8xf32>
    %123 = vector.multi_reduction <add>, %122, %cst_52 [1] : vector<8x8xf32> to vector<8xf32>
    %124 = vector.shape_cast %123 : vector<8xf32> to vector<8x1xf32>
    %125 = tpu.reciprocal %124 {approx = true} : vector<8x1xf32> -> vector<8x1xf32>
    %126 = vector.broadcast %125 : vector<8x1xf32> to vector<8x8xf32>
    %127 = arith.mulf %122, %126 : vector<8x8xf32>
    %128 = arith.extf %112 : vector<8x8xbf16> to vector<8x8xf32>
    %cst_53 = arith.constant dense<0.000000e+00> : vector<8x8xf32>
    %129 = tpu.matmul %127, %128, %cst_53 {dimension_numbers = #tpu.dot_dimension_numbers<[1], [0], [0], [1], [0, 0, 1, 1], [], []>} : vector<8x8xf32>, vector<8x8xf32>, vector<8x8xf32> -> vector<8x8xf32>
    %130 = arith.truncf %129 : vector<8x8xf32> to vector<8x8xbf16>
    %c24 = arith.constant 24 : index
    %c0_54 = arith.constant 0 : index
    %131 = vector.load %arg7[%c24, %c0_54] : memref<32x32xbf16, #tpu.memory_space<vmem>>, vector<8x32xbf16>
    %cst_55 = arith.constant dense<0.000000e+00> : vector<8x32xf32>
    %132 = tpu.matmul %130, %131, %cst_55 {dimension_numbers = #tpu.dot_dimension_numbers<[1], [0], [0], [1], [0, 0, 1, 1], [], []>} : vector<8x8xbf16>, vector<8x32xbf16>, vector<8x32xf32> -> vector<8x32xf32>
    %133 = arith.addf %109, %132 : vector<8x32xf32>
    %134 = arith.truncf %133 : vector<8x32xf32> to vector<8x32xbf16>
    %c0_56 = arith.constant 0 : index
    %c0_57 = arith.constant 0 : index
    %c0_58 = arith.constant 0 : index
    %135 = vector.load %arg8[%c0_56, %c0_57, %c0_58] : memref<1x8x32xbf16, #tpu.memory_space<vmem>>, vector<1x8x32xbf16>
    %136 = vector.shape_cast %135 : vector<1x8x32xbf16> to vector<8x32xbf16>
    %137 = vector.shape_cast %134 : vector<8x32xbf16> to vector<1x8x32xbf16>
    tpu.vector_store %arg8[%c0_56, %c0_57, %c0_58], %137 {strides = array<i32>} : memref<1x8x32xbf16, #tpu.memory_space<vmem>>, vector<1x8x32xbf16>,
    return
  }
  func.func @transform_0(%arg0: i32) -> (i32, i32, i32) {
    %c0_i32 = arith.constant 0 : i32
    %c0_i32_0 = arith.constant 0 : i32
    %c0_i32_1 = arith.constant 0 : i32
    return %arg0, %c0_i32, %c0_i32_0 : i32, i32, i32
  }
  func.func @transform_1(%arg0: i32) -> (i32, i32) {
    %c0_i32 = arith.constant 0 : i32
    %c0_i32_0 = arith.constant 0 : i32
    %c0_i32_1 = arith.constant 0 : i32
    return %c0_i32, %c0_i32_0 : i32, i32
  }
  func.func @transform_2(%arg0: i32) -> (i32, i32) {
    %c0_i32 = arith.constant 0 : i32
    %c0_i32_0 = arith.constant 0 : i32
    %c0_i32_1 = arith.constant 0 : i32
    return %c0_i32, %c0_i32_0 : i32, i32
  }
  func.func @transform_3(%arg0: i32) -> (i32, i32) {
    %c0_i32 = arith.constant 0 : i32
    %c0_i32_0 = arith.constant 0 : i32
    %c0_i32_1 = arith.constant 0 : i32
    return %c0_i32, %c0_i32_0 : i32, i32
  }
  func.func @transform_4(%arg0: i32) -> (i32, i32) {
    %c0_i32 = arith.constant 0 : i32
    %c0_i32_0 = arith.constant 0 : i32
    %c0_i32_1 = arith.constant 0 : i32
    return %c0_i32, %c0_i32_0 : i32, i32
  }
  func.func @transform_5(%arg0: i32) -> (i32, i32) {
    %c0_i32 = arith.constant 0 : i32
    %c0_i32_0 = arith.constant 0 : i32
    %c0_i32_1 = arith.constant 0 : i32
    return %c0_i32, %c0_i32_0 : i32, i32
  }
  func.func @transform_6(%arg0: i32) -> (i32, i32) {
    %c0_i32 = arith.constant 0 : i32
    %c0_i32_0 = arith.constant 0 : i32
    %c0_i32_1 = arith.constant 0 : i32
    return %c0_i32, %c0_i32_0 : i32, i32
  }
  func.func @transform_7(%arg0: i32) -> (i32, i32, i32) {
    %c0_i32 = arith.constant 0 : i32
    %c0_i32_0 = arith.constant 0 : i32
    %c0_i32_1 = arith.constant 0 : i32
    return %arg0, %c0_i32, %c0_i32_0 : i32, i32, i32
  }
  func.func @transform_8(%arg0: i32) -> (i32, i32, i32) {
    %c0_i32 = arith.constant 0 : i32
    %c0_i32_0 = arith.constant 0 : i32
    %c0_i32_1 = arith.constant 0 : i32
    return %arg0, %c0_i32, %c0_i32_0 : i32, i32, i32
  }
  func.func @transform_9(%arg0: i32) -> (i32, i32, i32) {
    %c0_i32 = arith.constant 0 : i32
    %c0_i32_0 = arith.constant 0 : i32
    %c0_i32_1 = arith.constant 0 : i32
    return %arg0, %c0_i32, %c0_i32_0 : i32, i32, i32
  }
}

</mosaic_0001>

<bundles_post_ra>
// kernel: tile.16
= control target key start
LH: loop header
LB: loop body
LE: loop exit
PB: predicated region body
PF: predicated region fallthrough
CT: control target
= control target key end

     0   :  { %s22_s0 = inlined_call_operand.vmem [shape: f32[2], index: 0, kind: input, shape index: {}]   ;;  %s23_s1 = inlined_call_operand.vmem [shape: f32[2,2], index: 1, kind: output, shape index: {}]  }
   0x1   :  { %v4_v0 = vld [vmem:[%s22_s0] ss:$0 sm:$0xff] }
   0x2   :  { %5 = vst [vmem:[%s23_s1] sm:$0x3] %v4_v0 }

// kernel: mul.5
= control target key start
LH: loop header
LB: loop body
LE: loop exit
PB: predicated region body
PF: predicated region fallthrough
CT: control target
= control target key end

     0   :  { %vm7_vm0 = vcmask 15360   ;;  %vm13_vm1 = vcmask 31760   ;;  %s39_s0 = inlined_call_operand.vmem [shape: f32[2,2], index: 0, kind: input, shape index: {}]   ;;  %s40_s1 = inlined_call_operand.vmem [shape: f32[4], index: 1, kind: output, shape index: {}]  }
   0x1   :  { %v4_v0 = vld [vmem:[%s39_s0] sm:$0x3]  ;;  %s22_s0 = smov 2  }
   0x2   :  { %5 = vst [vmem:[#allocation1] sm:$0x3] %v4_v0 }
   0x9   :  { %v10_v1 = vld [vmem:[#allocation1 + $0x1] sm:$0x1]   ;;  %v6_v2 = vld [vmem:[#allocation1] sm:$0x1]  }
   0xa   :  { %11 = vrot.lane.b32.xlu0 %v10_v1, %s22_s0  ;;  %8 = vst.msk [vmem:[#allocation0] sm:$0x1] %vm7_vm0, %v6_v2  }
  0x7c   :  { %v12_v3 = vpop.permute.xlu0 %11  }
  0x7d   :  { %14 = vst.msk [vmem:[#allocation0] sm:$0x1] %vm13_vm1, %v12_v3  }
  0x84   :  { %v17_v4 = vld [vmem:[#allocation0] sm:$0x1] }
  0x85   :  { %20 = vst [vmem:[%s40_s1] sm:$0x1] %v17_v4 }

// kernel: _lambda_.1
= control target key start
LH: loop header
LB: loop body
LE: loop exit
PB: predicated region body
PF: predicated region fallthrough
CT: control target
= control target key end

     0   :  { %15 = vsyncpa [#allocation3], 0  ;;  %s1405_s0 = inlined_call_operand.vmem [shape: bf16[2,8,32], index: 0, kind: input, shape index: {}]   ;;  %s1406_s1 = inlined_call_operand.vmem [shape: bf16[32,64], index: 1, kind: input, shape index: {}]   ;;  %s1407_s2 = inlined_call_operand.vmem [shape: bf16[1,64], index: 2, kind: input, shape index: {}]   ;;  %s1408_s3 = inlined_call_operand.vmem [shape: bf16[8,32], index: 3, kind: input, shape index: {}]   ;;  %s1409_s4 = inlined_call_operand.vmem [shape: bf16[8,32], index: 4, kind: input, shape index: {}]   ;;  %s1410_s5 = inlined_call_operand.vmem [shape: bf16[32,32], index: 5, kind: input, shape index: {}]   ;;  %s1411_s6 = inlined_call_operand.vmem [shape: bf16[32,32], index: 6, kind: input, shape index: {}]   ;;  %s1412_s7 = inlined_call_operand.hbm [shape: bf16[2,8,32], index: 7, kind: output, shape index: {0}]   ;;  %s1413_s8 = inlined_call_operand.vmem [shape: bf16[2,8,16], index: 8, kind: output, shape index: {1}]   ;;  %s1414_s9 = inlined_call_operand.vmem [shape: bf16[2,8,16], index: 9, kind: output, shape index: {2}]  }
   0x1   :  { %17 = vsyncpa [#allocation3 + $0x1], 0  ;;  %s1199_s30 = smov 0   ;;  %s1201_s10 = smov 0  }
   0x2   :  { %s1203_s11 = smov 0   ;;  %s1205_s12 = smov 0  }
   0x3 LB: > { %s1220_s13 = sadd.s32 4294967295, %s1139_s12   ;;  %s962_s14 = sadd.s32 4294967294, %s1139_s12   ;;  %s1139_s12 = sphi %s1205_s12, %s1420_s12   ;;  %s1135_s11 = sphi %s1203_s11, %s1419_s11   ;;  %s1131_s10 = sphi %s1201_s10, %s1418_s10   ;;  %s1127_s30 = sphi %s1199_s30, %s1417_s30  }
   0x4   : > { %s1224_s15 = sadd.s32 1, %s1139_s12   ;;  %s182_s16 = sadd.s32 1, %s1135_s11 }
   0x5   : > { %s179_s17 = ssub.s32 %s1139_s12, %s1224_s15  ;;  %p192_p0 = scmp.ne.s32.totalorder %s1135_s11, %s1131_s10 }
   0x6   : > { %p180_p1 = scmp.eq.s32.totalorder %s179_s17, 0  ;;  %p193_p2 = scmp.eq.s32.totalorder %s1220_s13, 1 }
   0x7   : > { %p198_p3 = scmp.ne.s32.totalorder %s1131_s10, %s1127_s30  ;;  %p199_p4 = scmp.eq.s32.totalorder %s962_s14, 1 }
   0x8   : > { %s1235_s18 = scalar_select %p180_p1, %s1135_s11, %s182_s16  }
   0x9   : > { %p1237_p5 = por %p193_p2, %p192_p0  ;;  %p1241_p6 = por %p199_p4, %p198_p3 }
   0xa   : > { %p965_p7 = scmp.ge.s32.totalorder %s1139_s12, 1  ;;  %p294_p8 = scmp.lt.s32.totalorder %s1139_s12, 3 }
   0xc   : > { %p295_p9 = pnand %p965_p7, %p294_p8 }
   0xd   : > { %p337_p10 = scmp.lt.s32.totalorder (!%p295_p9), %s1220_s13, 1  ;;  %s1141_s26 = smov (!%p295_p9), 96  }
   0xe   : > { %298 = sbr.rel (%p295_p9) target bundleno = 1854 (0x73e), region = 48  ;;  %s1142_s14 = smov (!%p295_p9), 32  }
   0xf   : > { %s1143_s21 = smov (!%p295_p9), 120   ;;  %s1144_s22 = smov (!%p295_p9), 80  }
  0x10   : > { %s1145_s23 = smov (!%p295_p9), 104   ;;  %s1146_s24 = smov (!%p295_p9), 88  }
  0x11   : > { %s1147_s25 = smov (!%p295_p9), 112   ;;  %s1148_s17 = smov (!%p295_p9), 72  }
  0x13   : > { %v1010_v0 = vld [vmem:[%s1406_s1 + $0x8] sm:$0xff]  ;;  %v1009_v2 = vld [vmem:[%s1406_s1] sm:$0xff]  ;;  %s338_s27 = scalar_select %p337_p10, %s1220_s13, 1  ;;  %vm370_vm0 = vcmask 261120   ;;  %vm448_vm1 = vcmask 130048   ;;  %vm502_vm2 = vcmask 64512   ;;  %v493_v55 = vlaneseq }
  0x14   : > { %v1012_v1 = vld [vmem:[%s1410_s5 + $0x8] sm:$0xff]  ;;  %380 = vmatpush.bf16.msra.mxu0 %v1010_v0  ;;  %v1011_v4 = vld [vmem:[%s1410_s5] sm:$0xff]  ;;  %vm626_vm4 = vcmask 1043456   ;;  %vm487_vm5 = vcmask 125952   ;;  %vm823_vm6 = vcmask 257024  }
  0x15   : > { %415 = vmatpush.bf16.msra.mxu1 %v1012_v1  ;;  %s1258_s28 = sshll.u32 %s338_s27, 2  ;;  %v1013_v5 = vld [vmem:[%s1410_s5] sm:$0xff]  ;;  %v1303_v56 = vshrl.u32 %v493_v55, 7  ;;  %v1305_v57 = vand.u32 127, %v493_v55 }
  0x16   : > { %s340_s16 = scalar_lea.vmem %s1405_s0, %s1258_s28  ;;  %459 = vmatpush.bf16.msra.mxu2 %v1013_v5  ;;  %v355_v6 = vld [vmem:[%s1407_s2] sm:$0x1] }
  0x17   : > { %v350_v3 = vld [vmem:[%s340_s16] sm:$0xf]  ;;  %v356_v7 = vunpack.c.l.bf16 %v355_v6  ;;  %vm497_vm3 = vcmp.le.s32.totalorder %v1305_v57, %v1303_v56  ;;  %s344_s16 = scalar_lea.vmem %s1413_s8, %s1258_s28 }
  0x18   : > { %381 = vmatpush.bf16.msra.mxu0 %v1009_v2  ;;  %v388_v15 = vld [vmem:[%s1408_s3] sm:$0xf] }
  0x19   : > { %416 = vmatpush.bf16.msra.mxu1 %v1011_v4  ;;  %v357_v8 = vperm.slane %v356_v7, 0  ;;  %v424_v16 = vunpack.c.l.bf16 %v388_v15  ;;  %v389_v19 = vld [vmem:[%s1409_s4] sm:$0xf] }
  0x1a   : > { %v428_v23 = vunpack.c.l.bf16 %v389_v19  ;;  %v563_v15 = vld [vmem:[%s1411_s6] sm:$0xf] }
  0x1b   : > { %978 = vmatmul.msk.bf16.vlgmr.msra.gmra.mxu0 %vm370_vm0, %v350_v3 }
  0x98   : > { %v383_v9 = vpop.f32.mrf.mxu0 }
  0x99   : > { %v384_v10 = vadd.f32 %v383_v9, %v357_v8 }
  0x9b   : > { %v1273_v11 = vpack.c.bf16 %v384_v10, %v384_v10 }
  0x9d   : > { %987 = vmatmul.msk.bf16.vlgmr.msra.gmra.mxu1 %vm370_vm0, %v1273_v11  ;;  %v438_v12 = vunpack.c.l.b16 %v1273_v11  ;;  %v1283_v18 = vunpack.c.l.bf16 %v1273_v11 }
  0x9f   : > { %v439_v13 = vpack.c.b16 %v438_v12, %v438_v12  ;;  %v425_v21 = vmul.f32 %v424_v16, %v1283_v18 }
  0xa0   : > { %v385_v14 = vpop.f32.mrf.mxu0 }
  0xa1   : > { %440 = vrot.lane.b32.xlu0 %v439_v13, %s1141_s26  ;;  %v426_v25 = vpack.c.bf16 %v425_v21, %v425_v21 }
  0xa3   : > { %v431_v29 = vunpack.c.l.bf16 %v426_v25 }
  0xa9   : > { %467 = vrot.lane.b32.xlu0 %v424_v16, %s1142_s14  ;;  %v647_v16 = vsel %vm626_vm4, %v563_v15, 0 }
 0x113   : > { %v441_v17 = vpop.permute.xlu0 %440 }
 0x114   : > { %992 = vmatmul.msk.bf16.vlgmr.msra.gmra.mxu2 %vm448_vm1, %v441_v17 }
 0x11a   : > { %v418_v20 = vpop.f32.mrf.mxu1 }
 0x11b   : > { %v422_v22 = vpack.c.bf16 %v418_v20, %v418_v20  ;;  %v468_v42 = vpop.permute.xlu0 %467 }
 0x11c   : > { %v470_v43 = vmul.f32 %v468_v42, %v1283_v18 }
 0x11d   : > { %v427_v24 = vunpack.c.l.bf16 %v422_v22 }
 0x11e   : > { %v471_v44 = vpack.c.bf16 %v470_v43, %v470_v43 }
 0x11f   : > { %v429_v26 = vmul.f32 %v428_v23, %v427_v24 }
 0x120   : > { %v475_v45 = vunpack.c.l.bf16 %v471_v44 }
 0x121   : > { %v430_v27 = vpack.c.bf16 %v429_v26, %v429_v26 }
 0x122   : > { %v420_v28 = vpop.f32.mrf.mxu1 }
 0x123   : > { %v432_v30 = vunpack.c.l.bf16 %v430_v27  ;;  %v622_v27 = vld [vmem:[%s1411_s6 + $0x4] sm:$0xf] }
 0x124   : > { %v628_v28 = vsel %vm626_vm4, %v622_v27, 0 }
 0x125   : > { %v433_v31 = vadd.f32 %v432_v30, %v431_v29 }
 0x127   : > { %v434_v32 = vpack.c.bf16 %v433_v31, %v433_v31 }
 0x129   : > { %v565_v33 = vunpack.c.l.b16 %v434_v32 }
 0x12b   : > { %v1289_v34 = vpack.c.b16 %v565_v33, %v565_v33 }
 0x12d   : > { %567 = vrot.lane.b32.xlu2 %v1289_v34, %s1143_s21 }
 0x187   : > { %v568_v54 = vpop.permute.xlu2 %567 }
 0x197   : > { %v461_v35 = vpop.f32.mrf.mxu2 }
 0x198   : > { %v465_v36 = vpack.c.bf16 %v461_v35, %v461_v35 }
 0x19a   : > { %v472_v37 = vunpack.c.l.bf16 %v465_v36 }
 0x19c   : > { %v473_v38 = vmul.f32 %v472_v37, %v428_v23 }
 0x19e   : > { %v474_v39 = vpack.c.bf16 %v473_v38, %v473_v38 }
 0x19f   : > { %v463_v40 = vpop.f32.mrf.mxu2 }
 0x1a0   : > { %v476_v41 = vunpack.c.l.bf16 %v474_v39 }
 0x1a2   : > { %478 = vrot.lane.b32.xlu1 %v476_v41, %s1142_s14 }
 0x214   : > { %v479_v46 = vpop.permute.xlu1 %478 }
 0x215   : > { %v481_v47 = vadd.f32 %v479_v46, %v475_v45 }
 0x217   : > { %v1294_v48 = vpack.c.bf16 %v481_v47, %v481_v47 }
 0x219   : > { %v498_v49 = vunpack.c.l.b16 %v1294_v48 }
 0x21b   : > { %v499_v50 = vpack.c.b16 %v498_v49, %v498_v49 }
 0x21d   : > { %500 = vrot.lane.b32.xlu1 %v499_v50, %s1141_s26 }
 0x225   : > { %536 = vrot.lane.b32.xlu1 %v1283_v18, %s1144_s22 }
 0x28f   : > { %v501_v51 = vpop.permute.xlu1 %500 }
 0x290   : > { %v507_v52 = vsel %vm502_vm2, %v501_v51, 0 }
 0x291   : > { %516 = vmatpush.bf16.xpose.msra.mxu3 %v507_v52  ;;  %579 = vmatpush.bf16.xpose.msrb.mxu0 %v507_v52 }
 0x297   : > { %v537_v53 = vpop.permute.xlu1 %536 }
 0x298   : > { %993 = vmatmul.msk.bf16.vlgmr.msra.gmra.mxu3 %vm502_vm2, %v434_v32  ;;  %557 = vmatpush.msrb.mxu2 %v537_v53 }
 0x299   : > { %995 = vmatmul.msk.bf16.vlgmr.msrb.gmra.mxu0 %vm502_vm2, %v568_v54  ;;  %616 = vmatpush.msrb.mxu1 %v537_v53 }
 0x29a   : > { %656 = vmatpush.bf16.msra.mxu2 %v647_v16  ;;  %637 = vmatpush.bf16.msrb.mxu3 %v628_v28 }
 0x316   : > { %v581_v58 = vpop.f32.mrf.mxu0 }
 0x317   : > { %v585_v59 = vmul.f32 0.35355338, %v581_v58 }
 0x319   : > { %v586_v60 = vsel %vm497_vm3, %v585_v59, -inf }
 0x31a   : > { %v587_v61 = vsel %vm502_vm2, %v586_v60, -inf }
 0x31b   : > { %588 = vmax.xlane.f32.xlu1 %v587_v61  ;;  %v518_v62 = vpop.f32.mrf.mxu3 }
 0x31c   : > { %v522_v63 = vmul.f32 0.35355338, %v518_v62 }
 0x31e   : > { %v583_v0 = vpop.f32.mrf.mxu0  ;;  %v523_v1 = vsel %vm497_vm3, %v522_v63, -inf  ;;  %v725_v63 = vld [vmem:[%s1411_s6 + $0x8] sm:$0xf] }
 0x31f   : > { %v524_v2 = vsel %vm502_vm2, %v523_v1, -inf  ;;  %v730_v0 = vsel %vm626_vm4, %v725_v63, 0 }
 0x320   : > { %525 = vmax.xlane.f32.xlu2 %v524_v2  ;;  %739 = vmatpush.bf16.msra.mxu3 %v730_v0 }
 0x323   : > { %v520_v3 = vpop.f32.mrf.mxu3 }
 0x334   : > { %746 = vrot.lane.b32.xlu1 %v1289_v34, %s1145_s23  ;;  %s1006_s23 = sshll.u32 %s1220_s13, 2 }
 0x38e   : > { %v589_v4 = vpop.xlane.xlu1 %588 }
 0x38f   : > { %v590_v5 = vsub.f32 %v586_v60, %v589_v4 }
 0x391   : > { %v591_v6 = vmul.f32 1.442695, %v590_v5 }
 0x393   : > { %1061 = vpow2.f32 %v591_v6  ;;  %v526_v7 = vpop.xlane.xlu2 %525 }
 0x394   : > { %v527_v8 = vsub.f32 %v523_v1, %v526_v7  ;;  %v801_v1 = vld [vmem:[%s1411_s6 + $0xc] sm:$0xf] }
 0x395   : > { %v806_v2 = vsel %vm626_vm4, %v801_v1, 0 }
 0x396   : > { %v528_v9 = vmul.f32 1.442695, %v527_v8 }
 0x398   : > { %1063 = vpow2.f32 %v528_v9 }
 0x399   : > { %v1062_v10 = vpop.eup %1061 }
 0x39a   : > { %v593_v12 = vsel %vm502_vm2, %v1062_v10, 0.0 }
 0x39b   : > { %594 = vadd.xlane.f32.xlu2 %v593_v12 }
 0x39e   : > { %v1064_v13 = vpop.eup %1063 }
 0x39f   : > { %v530_v14 = vsel %vm502_vm2, %v1064_v13, 0.0 }
 0x3a0   : > { %531 = vadd.xlane.f32.xlu0 %v530_v14 }
 0x3a6   : > { %v747_v38 = vpop.permute.xlu1 %746 }
 0x3b3   : > { %664 = vrot.lane.b32.xlu2 %v499_v50, %s1146_s24  ;;  %s348_s24 = scalar_lea.vmem %s1414_s9, %s1258_s28 }
 0x3b4   : > { %662 = vrot.lane.b32.xlu0 %v1289_v34, %s1147_s25  ;;  %s844_s25 = scalar_lea.hbm %s1412_s7, %s1006_s23 }
 0x3b5   : > { %s848_s29 = sshll.u32 %s844_s25, 4  ;;  %s849_s29 = int_to_ptr.hbm [resolvable:$true] %s848_s29 }
 0x3b6   : > { %s1091_s14 = sshra.s32 %s849_s29, 4  ;;  %s1092_s14 = int_to_ptr.hbm [resolvable:$true] %s1091_s14 }
 0x3b7   : > { %p1098_p0 = scmp.lt.s32.totalorder %s1092_s14, %s1412_s7 }
 0x40e   : > { %v595_v17 = vpop.xlane.xlu2 %594 }
 0x40f   : > { %1065 = vrcp.f32 %v595_v17 }
 0x413   : > { %v532_v19 = vpop.xlane.xlu0 %531 }
 0x414   : > { %1067 = vrcp.f32 %v532_v19 }
 0x415   : > { %v1066_v20 = vpop.eup %1065 }
 0x416   : > { %v665_v21 = vpop.permute.xlu2 %664  ;;  %v597_v22 = vmul.f32 %v1066_v20, %v1062_v10 }
 0x417   : > { %v670_v23 = vsel %vm502_vm2, %v665_v21, 0 }
 0x418   : > { %996 = vmatmul.msk.f32.vlgmr.msrb.gmra.mxu1 %vm502_vm2, %v597_v22 }
 0x419   : > { %679 = vmatpush.bf16.xpose.msra.mxu1 %v670_v23 }
 0x41a   : > { %v1068_v24 = vpop.eup %1067 }
 0x41b   : > { %v534_v25 = vmul.f32 %v1068_v24, %v1064_v13 }
 0x41d   : > { %994 = vmatmul.msk.f32.vlgmr.msrb.gmra.mxu2 %vm502_vm2, %v534_v25 }
 0x41e   : > { %758 = vmatpush.bf16.xpose.msrb.mxu2 %v670_v23 }
 0x421   : > { %815 = vmatpush.bf16.msrb.mxu1 %v806_v2 }
 0x426   : > { %v663_v26 = vpop.permute.xlu0 %662 }
 0x427   : > { %999 = vmatmul.msk.bf16.vlgmr.msra.gmra.mxu1 %vm502_vm2, %v663_v26 }
 0x495   : > { %v618_v29 = vpop.f32.mrf.mxu1 }
 0x496   : > { %v621_v30 = vpack.c.bf16 %v618_v29, %v618_v29 }
 0x498   : > { %997 = vmatmul.msk.bf16.vlgmr.msrb.gmra.mxu3 %vm502_vm2, %v621_v30 }
 0x4a0   : > { %v559_v31 = vpop.f32.mrf.mxu2 }
 0x4a1   : > { %v562_v32 = vpack.c.bf16 %v559_v31, %v559_v31 }
 0x4a3   : > { %998 = vmatmul.msk.bf16.vlgmr.msra.gmra.mxu2 %vm502_vm2, %v562_v32 }
 0x4a4   : > { %v681_v33 = vpop.f32.mrf.mxu1 }
 0x4a5   : > { %v685_v34 = vmul.f32 0.35355338, %v681_v33 }
 0x4a7   : > { %v686_v35 = vsel %vm497_vm3, %v685_v34, -inf }
 0x4a8   : > { %v687_v36 = vsel %vm502_vm2, %v686_v35, -inf }
 0x4a9   : > { %688 = vmax.xlane.f32.xlu0 %v687_v36 }
 0x4ac   : > { %v683_v37 = vpop.f32.mrf.mxu1 }
 0x4b3   : > { %1002 = vmatmul.msk.bf16.vlgmr.msrb.gmra.mxu2 %vm502_vm2, %v747_v38 }
 0x51b   : > { %v639_v39 = vpop.f32.mrf.mxu3 }
 0x51c   : > { %v689_v40 = vpop.xlane.xlu0 %688 }
 0x51d   : > { %v690_v41 = vsub.f32 %v686_v35, %v689_v40 }
 0x51f   : > { %v691_v42 = vmul.f32 1.442695, %v690_v41 }
 0x521   : > { %1069 = vpow2.f32 %v691_v42 }
 0x523   : > { %v641_v43 = vpop.f32.mrf.mxu3 }
 0x526   : > { %v658_v44 = vpop.f32.mrf.mxu2 }
 0x527   : > { %v1070_v45 = vpop.eup %1069  ;;  %v659_v46 = vadd.f32 %v658_v44, %v639_v39 }
 0x528   : > { %v693_v47 = vsel %vm502_vm2, %v1070_v45, 0.0 }
 0x529   : > { %694 = vadd.xlane.f32.xlu1 %v693_v47 }
 0x52e   : > { %v660_v49 = vpop.f32.mrf.mxu2 }
 0x536   : > { %v760_v50 = vpop.f32.mrf.mxu2 }
 0x537   : > { %v764_v51 = vmul.f32 0.35355338, %v760_v50 }
 0x539   : > { %v765_v52 = vsel %vm497_vm3, %v764_v51, -inf }
 0x53a   : > { %v766_v53 = vsel %vm502_vm2, %v765_v52, -inf }
 0x53b   : > { %767 = vmax.xlane.f32.xlu2 %v766_v53 }
 0x53e   : > { %v762_v54 = vpop.f32.mrf.mxu2 }
 0x542   : > { %489 = vrot.lane.b32.xlu1 %v1273_v11, %s1144_s22 }
 0x553   : > { %698 = vrot.lane.b32.xlu2 %v1283_v18, %s1148_s17  ;;  %s322_s17 = sand.u32 1, %s1131_s10  }
 0x554   : > { %s966_s21 = sshll.u32 %s322_s17, 2 }
 0x555   : > { %s324_s28 = scalar_lea.vmem [#allocation2], %s966_s21  ;;  %s1097_s21 = scalar_lea.hbm %s1412_s7, 8 }
 0x556   : > { %s846_s27 = sshll.u32 %s324_s28, 4  ;;  %s847_s27 = int_to_ptr.vmem [resolvable:$true] %s846_s27 }
 0x59c   : > { %v695_v55 = vpop.xlane.xlu1 %694 }
 0x59d   : > { %1071 = vrcp.f32 %v695_v55 }
 0x5a3   : > { %v1072_v56 = vpop.eup %1071 }
 0x5a4   : > { %v697_v61 = vmul.f32 %v1072_v56, %v1070_v45 }
 0x5ae   : > { %v768_v58 = vpop.xlane.xlu2 %767 }
 0x5af   : > { %v769_v59 = vsub.f32 %v765_v52, %v768_v58 }
 0x5b1   : > { %v770_v60 = vmul.f32 1.442695, %v769_v59 }
 0x5b3   : > { %1073 = vpow2.f32 %v770_v60 }
 0x5b4   : > { %v490_v57 = vpop.permute.xlu1 %489 }
 0x5b5   : > { %492 = vst.msk [vmem:[%s348_s24] sm:$0xf] %vm487_vm5, %v490_v57 }
 0x5b6   : > { %v699_v11 = vpop.permute.xlu2 %698 }
 0x5b7   : > { %719 = vmatpush.msra.mxu0 %v699_v11 }
 0x5b8   : > { %1000 = vmatmul.msk.f32.vlgmr.msra.gmra.mxu0 %vm502_vm2, %v697_v61 }
 0x5b9   : > { %v1074_v18 = vpop.eup %1073  ;;  %795 = vmatpush.msrb.mxu0 %v699_v11 }
 0x5ba   : > { %v772_v62 = vsel %vm502_vm2, %v1074_v18, 0.0 }
 0x5bb   : > { %773 = vadd.xlane.f32.xlu0 %v772_v62 }
 0x5cf   : > { %484 = vrot.lane.b32.xlu0 %v1294_v48, %s1141_s26  ;;  %s826_s26 = scalar_lea.sflag [#allocation3], %s322_s17 }
 0x62e   : > { %v774_v3 = vpop.xlane.xlu0 %773 }
 0x62f   : > { %1075 = vrcp.f32 %v774_v3 }
 0x635   : > { %v1076_v4 = vpop.eup %1075  ;;  %v721_v5 = vpop.f32.mrf.mxu0 }
 0x636   : > { %v776_v48 = vmul.f32 %v1076_v4, %v1074_v18  ;;  %v724_v6 = vpack.c.bf16 %v721_v5, %v721_v5 }
 0x638   : > { %1001 = vmatmul.msk.bf16.vlgmr.msra.gmra.mxu3 %vm502_vm2, %v724_v6  ;;  %1003 = vmatmul.msk.f32.vlgmr.msrb.gmra.mxu0 %vm502_vm2, %v776_v48 }
 0x641   : > { %v485_v7 = vpop.permute.xlu0 %484 }
 0x642   : > { %488 = vst.msk [vmem:[%s344_s16] sm:$0xf] %vm487_vm5, %v485_v7  ;;  %s1093_s16 = scalar_lea.hbm %s1092_s14, 4 }
 0x643   : > { %p1094_p11 = scmp.ne.s32.totalorder %s1092_s14, %s1093_s16  ;;  %p1099_p1 = scmp.lt.s32.totalorder %s1097_s21, %s1093_s16 }
 0x645   : > { %p1095_p12 = pnand %p1094_p11, %p1237_p5  ;;  %p1100_p2 = por %p1099_p1, %p1098_p0 }
 0x647   : > { %p1096_p13 = pneg %p1095_p12 }
 0x649   : > { %p1101_p3 = pnand %p1100_p2, %p1096_p13 }
 0x6b5   : > { %v797_v8 = vpop.f32.mrf.mxu0 }
 0x6b6   : > { %v800_v9 = vpack.c.bf16 %v797_v8, %v797_v8 }
 0x6b8   : > { %1004 = vmatmul.msk.bf16.vlgmr.msrb.gmra.mxu1 %vm502_vm2, %v800_v9 }
 0x6bb   : > { %v741_v10 = vpop.f32.mrf.mxu3 }
 0x6bc   : > { %v745_v12 = vadd.f32 %v741_v10, %v659_v46 }
 0x6c3   : > { %v743_v13 = vpop.f32.mrf.mxu3 }
 0x735   : > { %v817_v14 = vpop.f32.mrf.mxu1 }
 0x736   : > { %v821_v15 = vadd.f32 %v817_v14, %v745_v12 }
 0x738   : > { %v822_v16 = vpack.c.bf16 %v821_v15, %v821_v15 }
 0x73a   : > { %824 = vst.msk [vmem:[%s324_s28] sm:$0xf] %vm823_vm6, %v822_v16 }
 0x73b   : > { %1104 = shalt.err (!%p1101_p3)
}
 0x73c   : > { %1014 = dma.vmem_to_hbm [thread:$0]  (%p1237_p5), %s847_s27, 64, %s849_s29, %s826_s26  }
 0x73d   : > { %v819_v17 = vpop.f32.mrf.mxu1 }
 0x73e PF: > { %p1020_p4 = scmp.ge.s32.totalorder %s1139_s12, 2  ;;  %s866_s17 = sand.u32 1, %s1127_s30  }
 0x73f   : > { %s867_s25 = scalar_lea.sflag [#allocation3], %s866_s17 }
 0x740   : > { %p1017_p7 = pnand %p1020_p4, %p1241_p6 }
 0x742   : > { %p1018_p8 = pneg %p1017_p7 }
 0x744   : > { %1122 = dma.done.wait (%p1018_p8), %s867_s25, 64  }
 0x745   : > { %1124 = vsyncadd (%p1018_p8), %s867_s25, 4294967232  ;;  %p20_p9 = scmp.ge.s32.totalorder %s1224_s15, 4   ;;  %s1417_s30 = smov %s1131_s10 }
 0x746   : > { %s1418_s10 = smov %s1135_s11  ;;  %s1419_s11 = smov %s1235_s18 }
 0x747   : > { %s1420_s12 = smov %s1224_s15  ;;  %22 = sbr.rel (!%p20_p9) target bundleno = 3 (0x3), region = 107 }
 0x74c   :  { %887 = vsyncpa [#allocation3], 1 }
 0x74d   :  { %889 = vsyncpa [#allocation3 + $0x1], 1 }

</bundles_post_ra>
